<compile_context>
chip_gen: v7x
topology: tpu7x:2x2x1
jax: 0.10.0
libtpu: 0.0.40
codegen_flags: <defaults>
</compile_context>

<pallas_src>
import functools

import jax
import jax.numpy as jnp
import numpy as np
from jax.experimental import pallas as pl
from jax.experimental.pallas import tpu as pltpu


def _round_up(x, m):
    return ((x + m - 1) // m) * m


def _pick_tile_rows(ho, wo, other_parallel_steps):
    """Pick the output-row tile th (a divisor of Ho)."""
    best_d, best_key = ho, None
    for d in range(1, ho + 1):
        if ho % d:
            continue
        pos = d * wo                                  # output positions per step
        steps = other_parallel_steps * (ho // d)      # total parallel grid steps
        key = (
            steps >= 4,          # enough steps for both v7x TensorCores
            64 <= pos <= 2048,   # reasonable MXU M tile, bounded VMEM
            pos % 8 == 0,        # aligned reshape / full-sublane stores
            -abs(pos - 512),     # target ~512 output positions per step
        )
        if best_key is None or key > best_key:
            best_d, best_key = d, key
    return best_d


def _rank1_conv_kernel(x_ref, w_ref, o_ref, patch_ref, *, kernel_size, stride):
    """One grid step: a (th, wo, tn) output tile via ONE implicit-GEMM matmul.

    x_ref:     (Hp, Wp, Cp)        spatially padded NHWC image of this batch
    w_ref:     (k*k*Cp, tn)        tap-major packed, rank-1-perturbed weight
    o_ref:     (th, wo, tn)        output tile (lane-dense out-channel block)
    patch_ref: (th*wo, k*k*Cp)     VMEM scratch: im2col patch for this tile
    """
    k, s = kernel_size, stride
    th, wo, tn = o_ref.shape
    c = x_ref.shape[-1]

    row0 = pl.program_id(2) * (th * s)          # first padded-input row of tile
    if (th * s) % 8 == 0:
        row0 = pl.multiple_of(row0, 8)          # aligned vector loads

    # Build the (th*wo, k*k*c) patch in VMEM: k*k tap slices, channel-minor.
    for i in range(k):                          # unrolled kh*kw tap loop
        for j in range(k):
            if s == 1:
                rows, cols = pl.ds(row0 + i, th), pl.ds(j, wo)
            else:
                # TODO(synk): for stride>1, phase-split W in the wrapper so the
                # column slice is unit-stride (lane-strided loads cost XLU work).
                rows, cols = pl.ds(row0 + i, th, stride=s), pl.ds(j, wo, stride=s)
            t = i * k + j
            patch_ref[:, t * c:(t + 1) * c] = (
                x_ref[rows, cols, :].reshape(th * wo, c))

    # Single MXU matmul, contraction K = k*k*Cp (taps folded into K).
    acc = jnp.dot(patch_ref[...], w_ref[...], preferred_element_type=jnp.float32)
    # NOTE: module default use_bias=False; a bias would be a (1, tn) add here.
    o_ref[...] = acc.reshape(th, wo, tn).astype(o_ref.dtype)


def rank1_bayesian_conv2d(x, params, eps_u, eps_v, *, kernel_size, stride, padding):
    """Forward pass of Rank1BayesianConv2d.  x: (N, C_in, H, W) float32."""
    n, c_in, h, w = x.shape
    w_mean = params["weight_mean"]                         # (O, C_in, k, k)
    o_ch = w_mean.shape[0]
    k, s, p = kernel_size, stride, padding

    # --- reparameterized rank-1 samples (tiny, plain JAX glue) ---
    u_sigma = jax.nn.softplus(params["u_rho"]) + 1e-6      # stable log1p(exp(.))
    v_sigma = jax.nn.softplus(params["v_rho"]) + 1e-6
    u_sample = params["u"] + u_sigma * eps_u               # (O,1,1,1)
    v_sample = params["v"] + v_sigma * eps_v               # (1,C_in,k,k)

    # Fold the rank-1 perturbation into the weight ONCE (loop-invariant hoist).
    weight = w_mean * u_sample * v_sample                  # (O, C_in, k, k)

    ho = (h + 2 * p - k) // s + 1
    wo = (w + 2 * p - k) // s + 1
    hp, wp = h + 2 * p, w + 2 * p

    # MXU / vreg friendly padding: channels -> sublane mult, out-ch -> lane mult.
    c_pad = _round_up(c_in, 8)
    o_pad = _round_up(o_ch, 128)

    # NHWC, spatially zero-padded input; zero-padded channels contribute zeros.
    # TODO(synk): for small C_in/O, a W-on-lanes NCHW formulation would remove
    # these wrapper transposes and the O lane-padding entirely.
    x_nhwc = jnp.transpose(x, (0, 2, 3, 1))
    x_padded = jnp.pad(x_nhwc, ((0, 0), (p, p), (p, p), (0, c_pad - c_in)))

    # Weight packed as (k*k*C_pad, O_pad): tap-major / channel-minor contraction
    # rows (matching the in-kernel patch layout), lane-dense output channels.
    w_packed = jnp.transpose(weight, (2, 3, 1, 0))         # (k, k, C_in, O)
    w_packed = jnp.pad(w_packed,
                       ((0, 0), (0, 0), (0, c_pad - c_in), (0, o_pad - o_ch)))
    w_packed = w_packed.reshape(k * k * c_pad, o_pad)

    # Output-channel blocks: 128 lanes is native on all generations (v5e MXU is
    # 128-wide) and maximizes parallel grid steps for megacore sharding.
    tn = min(o_pad, 128)
    nb = o_pad // tn

    # Output-row tile: ~512 positions per step, multiple-of-8, and >=4 total
    # grid steps counting batch AND out-channel blocks (v7x 2-TC heuristic).
    th = _pick_tile_rows(ho, wo, n * nb)
    nh = ho // th

    # VMEM budget from actual block residency (double-buffered) + patch scratch.
    x_blk = hp * wp * c_pad * 4
    w_blk = (k * k * c_pad) * tn * 4
    o_blk = th * wo * tn * 4
    patch_blk = th * wo * (k * k * c_pad) * 4
    need = 2 * (x_blk + w_blk + o_blk) + patch_blk
    vmem_limit = int(min(max(need + (4 << 20), 32 << 20), 64 << 20))

    # TODO(synk): for very large images, window the H dim of x (halo of
    # th*s + k - 1 rows via manual DMA / emit_pipeline) instead of keeping the
    # whole padded image resident per batch; optionally pl.Buffered(1) on the
    # image BlockSpec since its block index only changes with the batch axis.
    kernel = functools.partial(_rank1_conv_kernel, kernel_size=k, stride=s)

    out_nhwc = pl.pallas_call(
        kernel,
        out_shape=jax.ShapeDtypeStruct((n, ho, wo, o_pad), jnp.float32),
        grid_spec=pltpu.PrefetchScalarGridSpec(
            num_scalar_prefetch=0,
            grid=(n, nb, nh),
            in_specs=[
                # Padded image of batch b: constant across the inner grid axes.
                pl.BlockSpec((None, hp, wp, c_pad), lambda b, ob, hb: (b, 0, 0, 0)),
                # Packed weight slab for output-channel block ob.
                pl.BlockSpec((k * k * c_pad, tn), lambda b, ob, hb: (0, ob)),
            ],
            out_specs=pl.BlockSpec((None, th, wo, tn),
                                   lambda b, ob, hb: (b, hb, 0, ob)),
            scratch_shapes=[pltpu.VMEM((th * wo, k * k * c_pad), jnp.float32)],
        ),
        compiler_params=pltpu.CompilerParams(
            dimension_semantics=("parallel", "parallel", "parallel"),
            vmem_limit_bytes=vmem_limit,
        ),
    )(x_padded, w_packed)

    out = jnp.transpose(out_nhwc[..., :o_ch], (0, 3, 1, 2))      # back to NCHW
    return out, u_sample, v_sample


def init_params(key, in_channels, out_channels, kernel_size):
    k1, k2, k3, k4, k5 = jax.random.split(key, 5)
    fan_in = in_channels * kernel_size * kernel_size
    he_std = jnp.sqrt(2.0 / fan_in)
    return {
        # he_normal on weight_mean
        "weight_mean": he_std * jax.random.normal(
            k1, (out_channels, in_channels, kernel_size, kernel_size), jnp.float32),
        # u ~ N(1, 0.5), v ~ N(1, 0.5)
        "u": 1.0 + 0.5 * jax.random.normal(k2, (out_channels, 1, 1, 1), jnp.float32),
        "v": 1.0 + 0.5 * jax.random.normal(
            k3, (1, in_channels, kernel_size, kernel_size), jnp.float32),
        # u_rho ~ U(-5, -4), v_rho ~ U(-3.6, -3.2)
        "u_rho": jax.random.uniform(
            k4, (out_channels, 1, 1, 1), jnp.float32, minval=-5.0, maxval=-4.0),
        "v_rho": jax.random.uniform(
            k5, (1, in_channels, kernel_size, kernel_size), jnp.float32,
            minval=-3.6, maxval=-3.2),
        # use_bias=False (module default) -> no bias parameter
    }


if __name__ == "__main__":
    key = jax.random.PRNGKey(0)
    kp, kx, keu, kev = jax.random.split(key, 4)

    in_channels, out_channels, kernel_size = 4, 8, 3
    stride, padding = 1, 1
    N, H, W = 2, 16, 16

    params = init_params(kp, in_channels, out_channels, kernel_size)
    x = jax.random.normal(kx, (N, in_channels, H, W), jnp.float32)
    eps_u = jax.random.normal(keu, (out_channels, 1, 1, 1), jnp.float32)
    eps_v = jax.random.normal(
        kev, (1, in_channels, kernel_size, kernel_size), jnp.float32)

    out, u_s, v_s = rank1_bayesian_conv2d(
        x, params, eps_u, eps_v,
        kernel_size=kernel_size, stride=stride, padding=padding)
    out = jax.block_until_ready(out)

    # Cross-check against XLA's conv with the same sampled weight.
    weight = params["weight_mean"] * u_s * v_s
    ref = jax.lax.conv_general_dilated(
        x, weight, window_strides=(stride, stride),
        padding=[(padding, padding), (padding, padding)],
        dimension_numbers=("NCHW", "OIHW", "NCHW"))
    ref = jax.block_until_ready(ref)

    np.testing.assert_allclose(np.asarray(out), np.asarray(ref),
                               rtol=1e-4, atol=1e-4)
    print("KERNEL_OK")
</pallas_src>

<mosaic_0001>
module attributes {stable_mosaic.version = 11 : i64} {
  func.func @_rank1_conv_kernel(%arg0: i32, %arg1: i32, %arg2: i32, %arg3: memref<1x18x18x8xf32, #tpu.memory_space<vmem>>, %arg4: memref<72x128xf32, #tpu.memory_space<vmem>>, %arg5: memref<1x8x16x128xf32, #tpu.memory_space<vmem>>, %arg6: memref<128x72xf32, #tpu.memory_space<vmem>>) attributes {dimension_semantics = [#tpu.dimension_semantics<parallel>, #tpu.dimension_semantics<parallel>, #tpu.dimension_semantics<parallel>], iteration_bounds = array<i64: 2, 1, 2>, scalar_prefetch = 0 : i64, scratch_operands = 1 : i64, tpu.core_type = #tpu.core_type<tc>, window_params = [{transform_indices = @transform_0, window_bounds = array<i64: 1, 18, 18, 8>}, {transform_indices = @transform_1, window_bounds = array<i64: 72, 128>}, {transform_indices = @transform_2, window_bounds = array<i64: 1, 8, 16, 128>}]} {
    %c8_i32 = arith.constant 8 : i32
    %0 = arith.muli %arg2, %c8_i32 : i32
    %1 = tpu.assume_multiple %0, 8 : i32
    %c0_i32 = arith.constant 0 : i32
    %2 = arith.addi %1, %c0_i32 : i32
    %c0 = arith.constant 0 : index
    %3 = arith.index_cast %2 : i32 to index
    %c0_0 = arith.constant 0 : index
    %c0_1 = arith.constant 0 : index
    %4 = vector.load %arg3[%c0, %3, %c0_0, %c0_1] : memref<1x18x18x8xf32, #tpu.memory_space<vmem>>, vector<1x8x16x8xf32>
    %5 = vector.shape_cast %4 : vector<1x8x16x8xf32> to vector<8x16x8xf32>
    %6 = vector.shape_cast %5 : vector<8x16x8xf32> to vector<128x8xf32>
    %c0_2 = arith.constant 0 : index
    %c0_3 = arith.constant 0 : index
    %7 = vector.load %arg6[%c0_2, %c0_3] : memref<128x72xf32, #tpu.memory_space<vmem>>, vector<128x8xf32>
    tpu.vector_store %arg6[%c0_2, %c0_3], %6 {strides = array<i32>} : memref<128x72xf32, #tpu.memory_space<vmem>>, vector<128x8xf32>,
    %c0_i32_4 = arith.constant 0 : i32
    %8 = arith.addi %1, %c0_i32_4 : i32
    %c0_5 = arith.constant 0 : index
    %9 = arith.index_cast %8 : i32 to index
    %c1 = arith.constant 1 : index
    %c0_6 = arith.constant 0 : index
    %10 = vector.load %arg3[%c0_5, %9, %c1, %c0_6] : memref<1x18x18x8xf32, #tpu.memory_space<vmem>>, vector<1x8x16x8xf32>
    %11 = vector.shape_cast %10 : vector<1x8x16x8xf32> to vector<8x16x8xf32>
    %12 = vector.shape_cast %11 : vector<8x16x8xf32> to vector<128x8xf32>
    %c0_7 = arith.constant 0 : index
    %c8 = arith.constant 8 : index
    %13 = vector.load %arg6[%c0_7, %c8] : memref<128x72xf32, #tpu.memory_space<vmem>>, vector<128x8xf32>
    tpu.vector_store %arg6[%c0_7, %c8], %12 {strides = array<i32>} : memref<128x72xf32, #tpu.memory_space<vmem>>, vector<128x8xf32>,
    %c0_i32_8 = arith.constant 0 : i32
    %14 = arith.addi %1, %c0_i32_8 : i32
    %c0_9 = arith.constant 0 : index
    %15 = arith.index_cast %14 : i32 to index
    %c2 = arith.constant 2 : index
    %c0_10 = arith.constant 0 : index
    %16 = vector.load %arg3[%c0_9, %15, %c2, %c0_10] : memref<1x18x18x8xf32, #tpu.memory_space<vmem>>, vector<1x8x16x8xf32>
    %17 = vector.shape_cast %16 : vector<1x8x16x8xf32> to vector<8x16x8xf32>
    %18 = vector.shape_cast %17 : vector<8x16x8xf32> to vector<128x8xf32>
    %c0_11 = arith.constant 0 : index
    %c16 = arith.constant 16 : index
    %19 = vector.load %arg6[%c0_11, %c16] : memref<128x72xf32, #tpu.memory_space<vmem>>, vector<128x8xf32>
    tpu.vector_store %arg6[%c0_11, %c16], %18 {strides = array<i32>} : memref<128x72xf32, #tpu.memory_space<vmem>>, vector<128x8xf32>,
    %c1_i32 = arith.constant 1 : i32
    %20 = arith.addi %1, %c1_i32 : i32
    %c0_12 = arith.constant 0 : index
    %21 = arith.index_cast %20 : i32 to index
    %c0_13 = arith.constant 0 : index
    %c0_14 = arith.constant 0 : index
    %22 = vector.load %arg3[%c0_12, %21, %c0_13, %c0_14] : memref<1x18x18x8xf32, #tpu.memory_space<vmem>>, vector<1x8x16x8xf32>
    %23 = vector.shape_cast %22 : vector<1x8x16x8xf32> to vector<8x16x8xf32>
    %24 = vector.shape_cast %23 : vector<8x16x8xf32> to vector<128x8xf32>
    %c0_15 = arith.constant 0 : index
    %c24 = arith.constant 24 : index
    %25 = vector.load %arg6[%c0_15, %c24] : memref<128x72xf32, #tpu.memory_space<vmem>>, vector<128x8xf32>
    tpu.vector_store %arg6[%c0_15, %c24], %24 {strides = array<i32>} : memref<128x72xf32, #tpu.memory_space<vmem>>, vector<128x8xf32>,
    %c1_i32_16 = arith.constant 1 : i32
    %26 = arith.addi %1, %c1_i32_16 : i32
    %c0_17 = arith.constant 0 : index
    %27 = arith.index_cast %26 : i32 to index
    %c1_18 = arith.constant 1 : index
    %c0_19 = arith.constant 0 : index
    %28 = vector.load %arg3[%c0_17, %27, %c1_18, %c0_19] : memref<1x18x18x8xf32, #tpu.memory_space<vmem>>, vector<1x8x16x8xf32>
    %29 = vector.shape_cast %28 : vector<1x8x16x8xf32> to vector<8x16x8xf32>
    %30 = vector.shape_cast %29 : vector<8x16x8xf32> to vector<128x8xf32>
    %c0_20 = arith.constant 0 : index
    %c32 = arith.constant 32 : index
    %31 = vector.load %arg6[%c0_20, %c32] : memref<128x72xf32, #tpu.memory_space<vmem>>, vector<128x8xf32>
    tpu.vector_store %arg6[%c0_20, %c32], %30 {strides = array<i32>} : memref<128x72xf32, #tpu.memory_space<vmem>>, vector<128x8xf32>,
    %c1_i32_21 = arith.constant 1 : i32
    %32 = arith.addi %1, %c1_i32_21 : i32
    %c0_22 = arith.constant 0 : index
    %33 = arith.index_cast %32 : i32 to index
    %c2_23 = arith.constant 2 : index
    %c0_24 = arith.constant 0 : index
    %34 = vector.load %arg3[%c0_22, %33, %c2_23, %c0_24] : memref<1x18x18x8xf32, #tpu.memory_space<vmem>>, vector<1x8x16x8xf32>
    %35 = vector.shape_cast %34 : vector<1x8x16x8xf32> to vector<8x16x8xf32>
    %36 = vector.shape_cast %35 : vector<8x16x8xf32> to vector<128x8xf32>
    %c0_25 = arith.constant 0 : index
    %c40 = arith.constant 40 : index
    %37 = vector.load %arg6[%c0_25, %c40] : memref<128x72xf32, #tpu.memory_space<vmem>>, vector<128x8xf32>
    tpu.vector_store %arg6[%c0_25, %c40], %36 {strides = array<i32>} : memref<128x72xf32, #tpu.memory_space<vmem>>, vector<128x8xf32>,
    %c2_i32 = arith.constant 2 : i32
    %38 = arith.addi %1, %c2_i32 : i32
    %c0_26 = arith.constant 0 : index
    %39 = arith.index_cast %38 : i32 to index
    %c0_27 = arith.constant 0 : index
    %c0_28 = arith.constant 0 : index
    %40 = vector.load %arg3[%c0_26, %39, %c0_27, %c0_28] : memref<1x18x18x8xf32, #tpu.memory_space<vmem>>, vector<1x8x16x8xf32>
    %41 = vector.shape_cast %40 : vector<1x8x16x8xf32> to vector<8x16x8xf32>
    %42 = vector.shape_cast %41 : vector<8x16x8xf32> to vector<128x8xf32>
    %c0_29 = arith.constant 0 : index
    %c48 = arith.constant 48 : index
    %43 = vector.load %arg6[%c0_29, %c48] : memref<128x72xf32, #tpu.memory_space<vmem>>, vector<128x8xf32>
    tpu.vector_store %arg6[%c0_29, %c48], %42 {strides = array<i32>} : memref<128x72xf32, #tpu.memory_space<vmem>>, vector<128x8xf32>,
    %c2_i32_30 = arith.constant 2 : i32
    %44 = arith.addi %1, %c2_i32_30 : i32
    %c0_31 = arith.constant 0 : index
    %45 = arith.index_cast %44 : i32 to index
    %c1_32 = arith.constant 1 : index
    %c0_33 = arith.constant 0 : index
    %46 = vector.load %arg3[%c0_31, %45, %c1_32, %c0_33] : memref<1x18x18x8xf32, #tpu.memory_space<vmem>>, vector<1x8x16x8xf32>
    %47 = vector.shape_cast %46 : vector<1x8x16x8xf32> to vector<8x16x8xf32>
    %48 = vector.shape_cast %47 : vector<8x16x8xf32> to vector<128x8xf32>
    %c0_34 = arith.constant 0 : index
    %c56 = arith.constant 56 : index
    %49 = vector.load %arg6[%c0_34, %c56] : memref<128x72xf32, #tpu.memory_space<vmem>>, vector<128x8xf32>
    tpu.vector_store %arg6[%c0_34, %c56], %48 {strides = array<i32>} : memref<128x72xf32, #tpu.memory_space<vmem>>, vector<128x8xf32>,
    %c2_i32_35 = arith.constant 2 : i32
    %50 = arith.addi %1, %c2_i32_35 : i32
    %c0_36 = arith.constant 0 : index
    %51 = arith.index_cast %50 : i32 to index
    %c2_37 = arith.constant 2 : index
    %c0_38 = arith.constant 0 : index
    %52 = vector.load %arg3[%c0_36, %51, %c2_37, %c0_38] : memref<1x18x18x8xf32, #tpu.memory_space<vmem>>, vector<1x8x16x8xf32>
    %53 = vector.shape_cast %52 : vector<1x8x16x8xf32> to vector<8x16x8xf32>
    %54 = vector.shape_cast %53 : vector<8x16x8xf32> to vector<128x8xf32>
    %c0_39 = arith.constant 0 : index
    %c64 = arith.constant 64 : index
    %55 = vector.load %arg6[%c0_39, %c64] : memref<128x72xf32, #tpu.memory_space<vmem>>, vector<128x8xf32>
    tpu.vector_store %arg6[%c0_39, %c64], %54 {strides = array<i32>} : memref<128x72xf32, #tpu.memory_space<vmem>>, vector<128x8xf32>,
    %c0_40 = arith.constant 0 : index
    %c0_41 = arith.constant 0 : index
    %56 = vector.load %arg6[%c0_40, %c0_41] : memref<128x72xf32, #tpu.memory_space<vmem>>, vector<128x72xf32>
    %c0_42 = arith.constant 0 : index
    %c0_43 = arith.constant 0 : index
    %57 = vector.load %arg4[%c0_42, %c0_43] : memref<72x128xf32, #tpu.memory_space<vmem>>, vector<72x128xf32>
    %cst = arith.constant dense<0.000000e+00> : vector<128x128xf32>
    %58 = tpu.matmul %56, %57, %cst {dimension_numbers = #tpu.dot_dimension_numbers<[1], [0], [0], [1], [0, 0, 1, 1], [], []>} : vector<128x72xf32>, vector<72x128xf32>, vector<128x128xf32> -> vector<128x128xf32>
    %59 = vector.shape_cast %58 : vector<128x128xf32> to vector<8x16x128xf32>
    %c0_44 = arith.constant 0 : index
    %c0_45 = arith.constant 0 : index
    %c0_46 = arith.constant 0 : index
    %c0_47 = arith.constant 0 : index
    %60 = vector.load %arg5[%c0_44, %c0_45, %c0_46, %c0_47] : memref<1x8x16x128xf32, #tpu.memory_space<vmem>>, vector<1x8x16x128xf32>
    %61 = vector.shape_cast %60 : vector<1x8x16x128xf32> to vector<8x16x128xf32>
    %62 = vector.shape_cast %59 : vector<8x16x128xf32> to vector<1x8x16x128xf32>
    tpu.vector_store %arg5[%c0_44, %c0_45, %c0_46, %c0_47], %62 {strides = array<i32>} : memref<1x8x16x128xf32, #tpu.memory_space<vmem>>, vector<1x8x16x128xf32>,
    return
  }
  func.func @transform_0(%arg0: i32, %arg1: i32, %arg2: i32) -> (i32, i32, i32, i32) {
    %c0_i32 = arith.constant 0 : i32
    %c0_i32_0 = arith.constant 0 : i32
    %c0_i32_1 = arith.constant 0 : i32
    %c0_i32_2 = arith.constant 0 : i32
    return %arg0, %c0_i32, %c0_i32_0, %c0_i32_1 : i32, i32, i32, i32
  }
  func.func @transform_1(%arg0: i32, %arg1: i32, %arg2: i32) -> (i32, i32) {
    %c0_i32 = arith.constant 0 : i32
    %c0_i32_0 = arith.constant 0 : i32
    return %c0_i32, %arg1 : i32, i32
  }
  func.func @transform_2(%arg0: i32, %arg1: i32, %arg2: i32) -> (i32, i32, i32, i32) {
    %c0_i32 = arith.constant 0 : i32
    %c0_i32_0 = arith.constant 0 : i32
    return %arg0, %arg2, %c0_i32, %arg1 : i32, i32, i32, i32
  }
}

</mosaic_0001>

<bundles_post_ra>
// kernel: tpu_custom_call.1
= control target key start
LH: loop header
LB: loop body
LE: loop exit
PB: predicated region body
PF: predicated region fallthrough
CT: control target
= control target key end

     0   :  { %7 = vsyncpa [#allocation4], 0  ;;  %s2428_s0 = inlined_call_operand.vmem [shape: f32[2,18,18,8], index: 0, kind: input, shape index: {}]   ;;  %s2429_s1 = inlined_call_operand.vmem [shape: f32[72,128], index: 1, kind: input, shape index: {}]   ;;  %s2430_s2 = inlined_call_operand.hbm [shape: f32[2,16,16,128], index: 2, kind: output, shape index: {}]  }
   0x1   :  { %9 = vsyncpa [#allocation4 + $0x1], 0  ;;  %s1788_s9 = smov 0   ;;  %s1790_s10 = smov 0  }
   0x2   :  { %s1792_s11 = smov 0   ;;  %s1794_s12 = smov 0  }
   0x3   :  { %s1796_s13 = smov 0   ;;  %s1798_s14 = smov 0  }
   0x4   :  { %s1800_s15 = smov 0   ;;  %s1802_s16 = smov 0  }
   0x5 LB: > { %s1359_s17 = sadd.s32 4294967295, %s1761_s16   ;;  %s1360_s18 = sadd.s32 4294967294, %s1761_s16   ;;  %s1761_s16 = sphi %s1802_s16, %s15_s16   ;;  %s1757_s15 = sphi %s1800_s15, %s2439_s15   ;;  %s1753_s14 = sphi %s1798_s14, %s2438_s14   ;;  %s1749_s13 = sphi %s1796_s13, %s2437_s13   ;;  %s1745_s12 = sphi %s1794_s12, %s2436_s12   ;;  %s1741_s11 = sphi %s1792_s11, %s2435_s11   ;;  %s1737_s10 = sphi %s1790_s10, %s2434_s10   ;;  %s1733_s9 = sphi %s1788_s9, %s2433_s9  }
   0x6   : > { %s27_s19 = sadd.s32 1, %s1753_s14  ;;  %s34_s20 = sadd.s32 1, %s1757_s15 }
   0x7   : > { %p28_p0 = scmp.ge.s32.totalorder %s27_s19, 2  ;;  %p107_p1 = scmp.ne.s32.totalorder %s1741_s11, %s1737_s10 }
   0x8   : > { %p108_p2 = scmp.eq.s32.totalorder %s1359_s17, 3  ;;  %p113_p5 = scmp.ne.s32.totalorder %s1737_s10, %s1733_s9 }
   0x9   : > { %s2441_s19 = smov (%p28_p0, %s27_s19), 0  ;;  %s2443_s20 = smov (!%p28_p0, %s34_s20), %s1757_s15 }
   0xa   : > { %s91_s21 = ssub.s32 %s1753_s14, %s2441_s19  ;;  %p1839_p3 = por %p108_p2, %p107_p1 }
   0xb   : > { %p36_p4 = scmp.ge.s32.totalorder %s2443_s20, 2  ;;  %p114_p6 = scmp.eq.s32.totalorder %s1360_s18, 3 }
   0xc   : > { %p1364_p7 = scmp.ge.s32.totalorder %s1761_s16, 1  ;;  %p147_p9 = scmp.lt.s32.totalorder %s1761_s16, 5 }
   0xd   : > { %s2445_s20 = smov (%p36_p4, %s2443_s20), 0  ;;  %p1848_p8 = por %p114_p6, %p113_p5 }
   0xe   : > { %s90_s24 = ssub.s32 %s1757_s15, %s2445_s20  ;;  %s97_s25 = sadd.s32 1, %s1741_s11 }
   0xf   : > { %s92_s26 = sor.u32 %s91_s21, %s90_s24  ;;  %p148_p10 = pnand %p1364_p7, %p147_p9 }
  0x10   : > { %p95_p11 = scmp.eq.s32.totalorder %s92_s26, 0  ;;  %p173_p12 = scmp.lt.s32.totalorder (!%p148_p10), %s1749_s13, 1  ;;  %vm202_vm0 = vcmask (!%p148_p10), 64512   ;;  %v1017_v34 = vld [vmem:[%s2429_s1] sm:$0xff] (!%p148_p10)  ;;  %v1018_v35 = vld [vmem:[%s2429_s1 + $0x8] sm:$0xff] (!%p148_p10)  ;;  %v1019_v39 = vld [vmem:[%s2429_s1 + $0x10] sm:$0xff] (!%p148_p10) }
  0x11   : > { %151 = sbr.rel (%p148_p10) target bundleno = 635 (0x27b), region = 28  ;;  %s1763_s7 = smov (!%p148_p10), 8   ;;  %v1560_v36 = vpack.c.bf16 (!%p148_p10), %v1018_v35, %v1017_v34  ;;  %v1020_v40 = vld [vmem:[%s2429_s1 + $0x18] sm:$0xff] (!%p148_p10)  ;;  %v1021_v44 = vld [vmem:[%s2429_s1 + $0x20] sm:$0xff] (!%p148_p10)  ;;  %v1022_v45 = vld [vmem:[%s2429_s1 + $0x28] sm:$0xff] (!%p148_p10)  ;;  %vm299_vm1 = vcmask (!%p148_p10), 130112  }
  0x12   : > { %s1857_s27 = scalar_select %p95_p11, %s1741_s11, %s97_s25  }
  0x13   : > { %s1368_s29 = smul.u32 (!%p148_p10), 192, %s1745_s12  ;;  %s1764_s8 = smov (!%p148_p10), 16   ;;  %1561 = vmatprep.subr.bf16.mxu0 (!%p148_p10), %v1560_v36  ;;  %1576 = vmatprep.subr.bf16.mxu1 (!%p148_p10), %v1560_v36  ;;  %v1564_v41 = vpack.c.bf16 (!%p148_p10), %v1020_v40, %v1019_v39  ;;  %v1568_v46 = vpack.c.bf16 (!%p148_p10), %v1022_v45, %v1021_v44  ;;  %v1023_v47 = vld [vmem:[%s2429_s1 + $0x30] sm:$0xff] (!%p148_p10)  ;;  %v1024_v48 = vld [vmem:[%s2429_s1 + $0x38] sm:$0xff] (!%p148_p10)  ;;  %v1025_v50 = vld [vmem:[%s2429_s1 + $0x40] sm:$0xff] (!%p148_p10)  ;;  %vm396_vm2 = vcmask (!%p148_p10), 195712  }
  0x14   : > { %s1765_s17 = smov (!%p148_p10), 24   ;;  %s1766_s18 = smov (!%p148_p10), 32   ;;  %1563 = vmatpush3.bf16.msra.mxu0 (!%p148_p10), %v1560_v36  ;;  %1581 = vmatpush3.bf16.msra.mxu1 (!%p148_p10), %v1560_v36  ;;  %v1572_v49 = vpack.c.bf16 (!%p148_p10), %v1024_v48, %v1023_v47  ;;  %vm496_vm3 = vcmask (!%p148_p10), 261312   ;;  %vm593_vm4 = vcmask (!%p148_p10), 326912   ;;  %vm690_vm5 = vcmask (!%p148_p10), 392512  }
  0x15   : > { %s1767_s21 = smov (!%p148_p10), 40   ;;  %s1768_s24 = smov (!%p148_p10), 48   ;;  %1565 = vmatprep.subr.bf16.mxu0 (!%p148_p10), %v1564_v41  ;;  %1577 = vmatprep.subr.bf16.mxu1 (!%p148_p10), %v1564_v41  ;;  %vm790_vm6 = vcmask (!%p148_p10), 458112   ;;  %vm887_vm7 = vcmask (!%p148_p10), 523712   ;;  %vm984_vm8 = vcmask (!%p148_p10), 589312   ;;  %vm1026_vm9 = vcmask (!%p148_p10), 588800  }
  0x16   : > { %s1769_s25 = smov (!%p148_p10), 56   ;;  %s1770_s4 = smov (!%p148_p10), 64  }
  0x18   : > { %s174_s28 = scalar_select %p173_p12, %s1749_s13, 1  ;;  %1567 = vmatpush3.bf16.msra.mxu0 %v1564_v41  ;;  %1582 = vmatpush3.bf16.msra.mxu1 %v1564_v41 }
  0x19   : > { %1569 = vmatprep.subr.bf16.mxu0 %v1568_v46  ;;  %1578 = vmatprep.subr.bf16.mxu1 %v1568_v46 }
  0x1a   : > { %s1586_s30 = smul.u32 432, %s174_s28 }
  0x1c   : > { %s177_s5 = scalar_lea.vmem %s2428_s0, %s1586_s30  ;;  %1571 = vmatpush3.bf16.msra.mxu0 %v1568_v46  ;;  %1583 = vmatpush3.bf16.msra.mxu1 %v1568_v46 }
  0x1d   : > { %s1865_s6 = scalar_lea.vmem %s177_s5, %s1368_s29  ;;  %1573 = vmatprep.subr.bf16.mxu0 %v1572_v49  ;;  %1579 = vmatprep.subr.bf16.mxu1 %v1572_v49  ;;  %s1771_s29 = smov [#allocation3]  }
  0x1e   : > { %v220_v0 = vld [vmem:[%s1865_s6 + $0x9] sm:$0xff]  ;;  %v219_v1 = vld [vmem:[%s1865_s6 + $0x1] sm:$0xff]  ;;  %v1878_v4 = vld [vmem:[%s1865_s6 + $0x78] sm:$0xff]  ;;  %s1671_s30 = sshll.u32 %s1771_s29, 4  ;;  %s1672_s30 = int_to_ptr.vmem [resolvable:$false] %s1671_s30 }
  0x1f   : > { %253 = vrot.lane.b32.xlu1 %v220_v0, %s1763_s7  ;;  %251 = vrot.lane.b32.xlu0 %v219_v1, %s1763_s7  ;;  %v1872_v2 = vld [vmem:[%s1865_s6 + $0x69] sm:$0xff]  ;;  %v1875_v3 = vld [vmem:[%s1865_s6 + $0x61] sm:$0xff]  ;;  %213 = vst.msk [vmem:[#allocation2 + $0x50] sm:$0xff] %vm202_vm0, %v1878_v4  ;;  %s1673_s3 = scalar_lea.vmem %s1672_s30, 4096 }
  0x20   : > { %v1371_v5 = vld [vmem:[%s1865_s6 + $0x18] sm:$0xff]  ;;  %v1882_v6 = vld [vmem:[%s1865_s6 + $0x80] sm:$0xff]  ;;  %v1900_v10 = vld [vmem:[%s1865_s6 + $0x90] sm:$0xff]  ;;  %1575 = vmatpush3.bf16.msra.mxu0 %v1572_v49  ;;  %1584 = vmatpush3.bf16.msra.mxu1 %v1572_v49 }
  0x21   : > { %v1372_v7 = vld [vmem:[%s1865_s6 + $0x20] sm:$0xff]  ;;  %205 = vst.msk [vmem:[#allocation2 + $0x10] sm:$0xff] %vm202_vm0, %v1371_v5  ;;  %214 = vst.msk [vmem:[#allocation2 + $0x58] sm:$0xff] %vm202_vm0, %v1882_v6  ;;  %v1903_v11 = vld [vmem:[%s1865_s6 + $0x30] sm:$0xff]  ;;  %1534 = vmatprep.subr.mxu0 %v1025_v50  ;;  %1580 = vmatprep.subr.mxu1 %v1025_v50 }
  0x22   : > { %206 = vst.msk [vmem:[#allocation2 + $0x18] sm:$0xff] %vm202_vm0, %v1372_v7  ;;  %v1896_v8 = vld [vmem:[%s1865_s6 + $0x62] sm:$0xff]  ;;  %v1906_v12 = vld [vmem:[%s1865_s6 + $0x98] sm:$0xff]  ;;  %215 = vst.msk [vmem:[#allocation2 + $0x60] sm:$0xff] %vm202_vm0, %v1900_v10 }
  0x23   : > { %269 = vrot.lane.b32.xlu1 %v1872_v2, %s1763_s7  ;;  %267 = vrot.lane.b32.xlu0 %v1875_v3, %s1763_s7  ;;  %v316_v9 = vld [vmem:[%s1865_s6 + $0x2] sm:$0xff]  ;;  %v1909_v13 = vld [vmem:[%s1865_s6 + $0x38] sm:$0xff]  ;;  %207 = vst.msk [vmem:[#allocation2 + $0x20] sm:$0xff] %vm202_vm0, %v1903_v11  ;;  %216 = vst.msk [vmem:[#allocation2 + $0x68] sm:$0xff] %vm202_vm0, %v1906_v12 }
  0x24   : > { %208 = vst.msk [vmem:[#allocation2 + $0x28] sm:$0xff] %vm202_vm0, %v1909_v13  ;;  %v1923_v14 = vld [vmem:[%s1865_s6 + $0x6a] sm:$0xff]  ;;  %v186_v17 = vld [vmem:[%s1865_s6] sm:$0xff]  ;;  %v1461_v42 = vld [vmem:[%s1865_s6 + $0x92] sm:$0xff]  ;;  %1535 = vmatpush3.msra.mxu0 %v1025_v50  ;;  %1585 = vmatpush3.msra.mxu1 %v1025_v50 }
  0x25   : > { %v317_v15 = vld [vmem:[%s1865_s6 + $0xa] sm:$0xff]  ;;  %203 = vst.msk [vmem:[#allocation2] sm:$0xff] %vm202_vm0, %v186_v17  ;;  %v1943_v21 = vld [vmem:[%s1865_s6 + $0x60] sm:$0xff]  ;;  %v1453_v43 = vld [vmem:[%s1865_s6 + $0x32] sm:$0xff] }
  0x26   : > { %v187_v16 = vld [vmem:[%s1865_s6 + $0x8] sm:$0xff]  ;;  %211 = vst.msk [vmem:[#allocation2 + $0x40] sm:$0xff] %vm202_vm0, %v1943_v21  ;;  %v1954_v22 = vld [vmem:[%s1865_s6 + $0xb0] sm:$0xff]  ;;  %v1970_v24 = vld [vmem:[%s1865_s6 + $0x79] sm:$0xff] }
  0x27   : > { %364 = vrot.lane.b32.xlu1 %v1896_v8, %s1764_s8  ;;  %348 = vrot.lane.b32.xlu0 %v316_v9, %s1764_s8  ;;  %204 = vst.msk [vmem:[#allocation2 + $0x8] sm:$0xff] %vm202_vm0, %v187_v16  ;;  %v1930_v18 = vld [vmem:[%s1865_s6 + $0xa8] sm:$0xff]  ;;  %v1957_v23 = vld [vmem:[%s1865_s6 + $0x50] sm:$0xff]  ;;  %218 = vst.msk [vmem:[#allocation2 + $0x78] sm:$0xff] %vm202_vm0, %v1954_v22 }
  0x28   : > { %v1933_v19 = vld [vmem:[%s1865_s6 + $0x48] sm:$0xff]  ;;  %217 = vst.msk [vmem:[#allocation2 + $0x70] sm:$0xff] %vm202_vm0, %v1930_v18  ;;  %210 = vst.msk [vmem:[#allocation2 + $0x38] sm:$0xff] %vm202_vm0, %v1957_v23  ;;  %v1387_v25 = vld [vmem:[%s1865_s6 + $0x19] sm:$0xff] }
  0x29   : > { %v1940_v20 = vld [vmem:[%s1865_s6 + $0x68] sm:$0xff]  ;;  %209 = vst.msk [vmem:[#allocation2 + $0x30] sm:$0xff] %vm202_vm0, %v1933_v19  ;;  %v1987_v28 = vld [vmem:[%s1865_s6 + $0x7a] sm:$0xff]  ;;  %v1445_v32 = vld [vmem:[%s1865_s6 + $0x91] sm:$0xff] }
  0x2a   : > { %212 = vst.msk [vmem:[#allocation2 + $0x48] sm:$0xff] %vm202_vm0, %v1940_v20  ;;  %v1980_v26 = vld [vmem:[%s1865_s6 + $0x81] sm:$0xff]  ;;  %v1437_v33 = vld [vmem:[%s1865_s6 + $0x31] sm:$0xff]  ;;  %v1446_v37 = vld [vmem:[%s1865_s6 + $0x99] sm:$0xff] }
  0x2b   : > { %366 = vrot.lane.b32.xlu1 %v1923_v14, %s1764_s8  ;;  %350 = vrot.lane.b32.xlu0 %v317_v15, %s1764_s8  ;;  %v1388_v27 = vld [vmem:[%s1865_s6 + $0x21] sm:$0xff]  ;;  %v1438_v38 = vld [vmem:[%s1865_s6 + $0x39] sm:$0xff] }
  0x2c   : > { %v1403_v29 = vld [vmem:[%s1865_s6 + $0x1a] sm:$0xff]  ;;  %v2000_v30 = vld [vmem:[%s1865_s6 + $0x82] sm:$0xff]  ;;  %v1463_v15 = vld [vmem:[%s1865_s6 + $0xaa] sm:$0xff] }
  0x2d   : > { %v1404_v31 = vld [vmem:[%s1865_s6 + $0x22] sm:$0xff]  ;;  %v1462_v51 = vld [vmem:[%s1865_s6 + $0x9a] sm:$0xff]  ;;  %v1455_v16 = vld [vmem:[%s1865_s6 + $0x4a] sm:$0xff] }
  0x2e   : > { %v1454_v52 = vld [vmem:[%s1865_s6 + $0x3a] sm:$0xff]  ;;  %v1447_v61 = vld [vmem:[%s1865_s6 + $0xa9] sm:$0xff] }
  0x2f   : > { %464 = vrot.lane.b32.xlu1 %v1878_v4, %s1765_s17  ;;  %448 = vrot.lane.b32.xlu0 %v1371_v5, %s1765_s17  ;;  %v1439_v62 = vld [vmem:[%s1865_s6 + $0x49] sm:$0xff]  ;;  %v1433_v41 = vld [vmem:[%s1865_s6 + $0xc0] sm:$0xff] }
  0x30   : > { %v1434_v48 = vld [vmem:[%s1865_s6 + $0xc8] sm:$0xff] }
  0x33   : > { %466 = vrot.lane.b32.xlu1 %v1882_v6, %s1765_s17  ;;  %450 = vrot.lane.b32.xlu0 %v1372_v7, %s1765_s17 }
  0x37   : > { %561 = vrot.lane.b32.xlu1 %v1970_v24, %s1766_s18  ;;  %545 = vrot.lane.b32.xlu0 %v1387_v25, %s1766_s18 }
  0x3b   : > { %271 = vrot.lane.b32.xlu1 %v1970_v24, %s1763_s7  ;;  %255 = vrot.lane.b32.xlu0 %v1387_v25, %s1763_s7 }
  0x3f   : > { %563 = vrot.lane.b32.xlu1 %v1980_v26, %s1766_s18  ;;  %547 = vrot.lane.b32.xlu0 %v1388_v27, %s1766_s18 }
  0x43   : > { %658 = vrot.lane.b32.xlu1 %v1987_v28, %s1767_s21  ;;  %642 = vrot.lane.b32.xlu0 %v1403_v29, %s1767_s21 }
  0x47   : > { %273 = vrot.lane.b32.xlu1 %v1980_v26, %s1763_s7  ;;  %257 = vrot.lane.b32.xlu0 %v1388_v27, %s1763_s7 }
  0x4b   : > { %368 = vrot.lane.b32.xlu1 %v1987_v28, %s1764_s8  ;;  %352 = vrot.lane.b32.xlu0 %v1403_v29, %s1764_s8 }
  0x4f   : > { %660 = vrot.lane.b32.xlu1 %v2000_v30, %s1767_s21  ;;  %644 = vrot.lane.b32.xlu0 %v1404_v31, %s1767_s21 }
  0x53   : > { %758 = vrot.lane.b32.xlu1 %v1900_v10, %s1768_s24  ;;  %742 = vrot.lane.b32.xlu0 %v1903_v11, %s1768_s24 }
  0x57   : > { %370 = vrot.lane.b32.xlu1 %v2000_v30, %s1764_s8  ;;  %354 = vrot.lane.b32.xlu0 %v1404_v31, %s1764_s8  ;;  %v1464_v31 = vld [vmem:[%s1865_s6 + $0xb2] sm:$0xff] }
  0x5b   : > { %468 = vrot.lane.b32.xlu1 %v1900_v10, %s1765_s17  ;;  %452 = vrot.lane.b32.xlu0 %v1903_v11, %s1765_s17  ;;  %v1448_v10 = vld [vmem:[%s1865_s6 + $0xb1] sm:$0xff] }
  0x5c   : > { %v1440_v11 = vld [vmem:[%s1865_s6 + $0x51] sm:$0xff] }
  0x5f   : > { %760 = vrot.lane.b32.xlu1 %v1906_v12, %s1768_s24  ;;  %744 = vrot.lane.b32.xlu0 %v1909_v13, %s1768_s24 }
  0x63   : > { %855 = vrot.lane.b32.xlu1 %v1445_v32, %s1769_s25  ;;  %839 = vrot.lane.b32.xlu0 %v1437_v33, %s1769_s25 }
  0x67   : > { %470 = vrot.lane.b32.xlu1 %v1906_v12, %s1765_s17  ;;  %454 = vrot.lane.b32.xlu0 %v1909_v13, %s1765_s17 }
  0x6b   : > { %565 = vrot.lane.b32.xlu1 %v1445_v32, %s1766_s18  ;;  %549 = vrot.lane.b32.xlu0 %v1437_v33, %s1766_s18 }
  0x6f   : > { %857 = vrot.lane.b32.xlu1 %v1446_v37, %s1769_s25  ;;  %841 = vrot.lane.b32.xlu0 %v1438_v38, %s1769_s25 }
  0x73   : > { %952 = vrot.lane.b32.xlu1 %v1461_v42, %s1770_s4  ;;  %936 = vrot.lane.b32.xlu0 %v1453_v43, %s1770_s4 }
  0x77   : > { %275 = vrot.lane.b32.xlu1 %v1445_v32, %s1763_s7  ;;  %259 = vrot.lane.b32.xlu0 %v1437_v33, %s1763_s7  ;;  %v1456_v32 = vld [vmem:[%s1865_s6 + $0x52] sm:$0xff] }
  0x7b   : > { %567 = vrot.lane.b32.xlu1 %v1446_v37, %s1766_s18  ;;  %551 = vrot.lane.b32.xlu0 %v1438_v38, %s1766_s18 }
  0x7f   : > { %662 = vrot.lane.b32.xlu1 %v1461_v42, %s1767_s21  ;;  %646 = vrot.lane.b32.xlu0 %v1453_v43, %s1767_s21 }
  0x83   : > { %954 = vrot.lane.b32.xlu1 %v1462_v51, %s1770_s4  ;;  %938 = vrot.lane.b32.xlu0 %v1454_v52, %s1770_s4 }
  0x87   : > { %277 = vrot.lane.b32.xlu1 %v1446_v37, %s1763_s7  ;;  %261 = vrot.lane.b32.xlu0 %v1438_v38, %s1763_s7 }
  0x8b   : > { %372 = vrot.lane.b32.xlu1 %v1461_v42, %s1764_s8  ;;  %356 = vrot.lane.b32.xlu0 %v1453_v43, %s1764_s8 }
  0x8f   : > { %664 = vrot.lane.b32.xlu1 %v1462_v51, %s1767_s21  ;;  %648 = vrot.lane.b32.xlu0 %v1454_v52, %s1767_s21 }
  0x91   : > { %v254_v53 = vpop.permute.xlu1 %253  ;;  %v252_v54 = vpop.permute.xlu0 %251 }
  0x92   : > { %301 = vst.msk [vmem:[#allocation2 + $0x8] sm:$0xff] %vm299_vm1, %v254_v53  ;;  %300 = vst.msk [vmem:[#allocation2] sm:$0xff] %vm299_vm1, %v252_v54 }
  0x93   : > { %762 = vrot.lane.b32.xlu1 %v1930_v18, %s1768_s24  ;;  %746 = vrot.lane.b32.xlu0 %v1933_v19, %s1768_s24 }
  0x95   : > { %v270_v55 = vpop.permute.xlu1 %269  ;;  %v268_v56 = vpop.permute.xlu0 %267 }
  0x96   : > { %309 = vst.msk [vmem:[#allocation2 + $0x48] sm:$0xff] %vm299_vm1, %v270_v55  ;;  %308 = vst.msk [vmem:[#allocation2 + $0x40] sm:$0xff] %vm299_vm1, %v268_v56 }
  0x97   : > { %374 = vrot.lane.b32.xlu1 %v1462_v51, %s1764_s8  ;;  %358 = vrot.lane.b32.xlu0 %v1454_v52, %s1764_s8  ;;  %v1449_v51 = vld [vmem:[%s1865_s6 + $0xc1] sm:$0xff] }
  0x99   : > { %v365_v57 = vpop.permute.xlu1 %364  ;;  %v349_v58 = vpop.permute.xlu0 %348 }
  0x9a   : > { %405 = vst.msk [vmem:[#allocation2 + $0x40] sm:$0xff] %vm396_vm2, %v365_v57  ;;  %397 = vst.msk [vmem:[#allocation2] sm:$0xff] %vm396_vm2, %v349_v58  ;;  %v1450_v57 = vld [vmem:[%s1865_s6 + $0xc9] sm:$0xff] }
  0x9b   : > { %472 = vrot.lane.b32.xlu1 %v1930_v18, %s1765_s17  ;;  %456 = vrot.lane.b32.xlu0 %v1933_v19, %s1765_s17 }
  0x9d   : > { %v367_v59 = vpop.permute.xlu1 %366  ;;  %v351_v60 = vpop.permute.xlu0 %350 }
  0x9e   : > { %406 = vst.msk [vmem:[#allocation2 + $0x48] sm:$0xff] %vm396_vm2, %v367_v59  ;;  %398 = vst.msk [vmem:[#allocation2 + $0x8] sm:$0xff] %vm396_vm2, %v351_v60 }
  0x9f   : > { %764 = vrot.lane.b32.xlu1 %v1954_v22, %s1768_s24  ;;  %748 = vrot.lane.b32.xlu0 %v1957_v23, %s1768_s24 }
  0xa1   : > { %v465_v63 = vpop.permute.xlu1 %464  ;;  %v449_v0 = vpop.permute.xlu0 %448 }
  0xa2   : > { %505 = vst.msk [vmem:[#allocation2 + $0x40] sm:$0xff] %vm496_vm3, %v465_v63  ;;  %497 = vst.msk [vmem:[#allocation2] sm:$0xff] %vm496_vm3, %v449_v0 }
  0xa3   : > { %859 = vrot.lane.b32.xlu1 %v1447_v61, %s1769_s25  ;;  %843 = vrot.lane.b32.xlu0 %v1439_v62, %s1769_s25 }
  0xa5   : > { %v467_v1 = vpop.permute.xlu1 %466  ;;  %v451_v5 = vpop.permute.xlu0 %450 }
  0xa6   : > { %506 = vst.msk [vmem:[#allocation2 + $0x48] sm:$0xff] %vm496_vm3, %v467_v1  ;;  %498 = vst.msk [vmem:[#allocation2 + $0x8] sm:$0xff] %vm496_vm3, %v451_v5 }
  0xa7   : > { %474 = vrot.lane.b32.xlu1 %v1954_v22, %s1765_s17  ;;  %458 = vrot.lane.b32.xlu0 %v1957_v23, %s1765_s17 }
  0xa9   : > { %v562_v7 = vpop.permute.xlu1 %561  ;;  %v546_v9 = vpop.permute.xlu0 %545 }
  0xaa   : > { %602 = vst.msk [vmem:[#allocation2 + $0x40] sm:$0xff] %vm593_vm4, %v562_v7  ;;  %594 = vst.msk [vmem:[#allocation2] sm:$0xff] %vm593_vm4, %v546_v9  ;;  %v1466_v7 = vld [vmem:[%s1865_s6 + $0xca] sm:$0xff] }
  0xab   : > { %569 = vrot.lane.b32.xlu1 %v1447_v61, %s1766_s18  ;;  %553 = vrot.lane.b32.xlu0 %v1439_v62, %s1766_s18 }
  0xad   : > { %v272_v12 = vpop.permute.xlu1 %271  ;;  %v256_v13 = vpop.permute.xlu0 %255 }
  0xae   : > { %310 = vst.msk [vmem:[#allocation2 + $0x50] sm:$0xff] %vm299_vm1, %v272_v12  ;;  %302 = vst.msk [vmem:[#allocation2 + $0x10] sm:$0xff] %vm299_vm1, %v256_v13  ;;  %v1435_v13 = vld [vmem:[%s1865_s6 + $0xd8] sm:$0xff] }
  0xaf   : > { %861 = vrot.lane.b32.xlu1 %v1448_v10, %s1769_s25  ;;  %845 = vrot.lane.b32.xlu0 %v1440_v11, %s1769_s25 }
  0xb1   : > { %v564_v17 = vpop.permute.xlu1 %563  ;;  %v548_v18 = vpop.permute.xlu0 %547 }
  0xb2   : > { %603 = vst.msk [vmem:[#allocation2 + $0x48] sm:$0xff] %vm593_vm4, %v564_v17  ;;  %595 = vst.msk [vmem:[#allocation2 + $0x8] sm:$0xff] %vm593_vm4, %v548_v18  ;;  %v1436_v17 = vld [vmem:[%s1865_s6 + $0xe0] sm:$0xff] }
  0xb3   : > { %956 = vrot.lane.b32.xlu1 %v1463_v15, %s1770_s4  ;;  %940 = vrot.lane.b32.xlu0 %v1455_v16, %s1770_s4 }
  0xb5   : > { %v659_v19 = vpop.permute.xlu1 %658  ;;  %v643_v22 = vpop.permute.xlu0 %642 }
  0xb6   : > { %699 = vst.msk [vmem:[#allocation2 + $0x40] sm:$0xff] %vm690_vm5, %v659_v19  ;;  %691 = vst.msk [vmem:[#allocation2] sm:$0xff] %vm690_vm5, %v643_v22 }
  0xb7   : > { %279 = vrot.lane.b32.xlu1 %v1447_v61, %s1763_s7  ;;  %263 = vrot.lane.b32.xlu0 %v1439_v62, %s1763_s7 }
  0xb9   : > { %v274_v23 = vpop.permute.xlu1 %273  ;;  %v258_v25 = vpop.permute.xlu0 %257 }
  0xba   : > { %311 = vst.msk [vmem:[#allocation2 + $0x58] sm:$0xff] %vm299_vm1, %v274_v23  ;;  %303 = vst.msk [vmem:[#allocation2 + $0x18] sm:$0xff] %vm299_vm1, %v258_v25 }
  0xbb   : > { %571 = vrot.lane.b32.xlu1 %v1448_v10, %s1766_s18  ;;  %555 = vrot.lane.b32.xlu0 %v1440_v11, %s1766_s18 }
  0xbd   : > { %v369_v27 = vpop.permute.xlu1 %368  ;;  %v353_v29 = vpop.permute.xlu0 %352 }
  0xbe   : > { %407 = vst.msk [vmem:[#allocation2 + $0x50] sm:$0xff] %vm396_vm2, %v369_v27  ;;  %399 = vst.msk [vmem:[#allocation2 + $0x10] sm:$0xff] %vm396_vm2, %v353_v29 }
  0xbf   : > { %666 = vrot.lane.b32.xlu1 %v1463_v15, %s1767_s21  ;;  %650 = vrot.lane.b32.xlu0 %v1455_v16, %s1767_s21 }
  0xc1   : > { %v661_v33 = vpop.permute.xlu1 %660  ;;  %v645_v34 = vpop.permute.xlu0 %644 }
  0xc2   : > { %700 = vst.msk [vmem:[#allocation2 + $0x48] sm:$0xff] %vm690_vm5, %v661_v33  ;;  %692 = vst.msk [vmem:[#allocation2 + $0x8] sm:$0xff] %vm690_vm5, %v645_v34 }
  0xc3   : > { %958 = vrot.lane.b32.xlu1 %v1464_v31, %s1770_s4  ;;  %942 = vrot.lane.b32.xlu0 %v1456_v32, %s1770_s4 }
  0xc5   : > { %v759_v35 = vpop.permute.xlu1 %758  ;;  %v743_v36 = vpop.permute.xlu0 %742 }
  0xc6   : > { %799 = vst.msk [vmem:[#allocation2 + $0x40] sm:$0xff] %vm790_vm6, %v759_v35  ;;  %791 = vst.msk [vmem:[#allocation2] sm:$0xff] %vm790_vm6, %v743_v36 }
  0xc7   : > { %281 = vrot.lane.b32.xlu1 %v1448_v10, %s1763_s7  ;;  %265 = vrot.lane.b32.xlu0 %v1440_v11, %s1763_s7 }
  0xc9   : > { %v371_v37 = vpop.permute.xlu1 %370  ;;  %v355_v38 = vpop.permute.xlu0 %354 }
  0xca   : > { %408 = vst.msk [vmem:[#allocation2 + $0x58] sm:$0xff] %vm396_vm2, %v371_v37  ;;  %400 = vst.msk [vmem:[#allocation2 + $0x18] sm:$0xff] %vm396_vm2, %v355_v38 }
  0xcb   : > { %376 = vrot.lane.b32.xlu1 %v1463_v15, %s1764_s8  ;;  %360 = vrot.lane.b32.xlu0 %v1455_v16, %s1764_s8 }
  0xcd   : > { %v469_v39 = vpop.permute.xlu1 %468  ;;  %v453_v40 = vpop.permute.xlu0 %452 }
  0xce   : > { %507 = vst.msk [vmem:[#allocation2 + $0x50] sm:$0xff] %vm496_vm3, %v469_v39  ;;  %499 = vst.msk [vmem:[#allocation2 + $0x10] sm:$0xff] %vm496_vm3, %v453_v40 }
  0xcf   : > { %668 = vrot.lane.b32.xlu1 %v1464_v31, %s1767_s21  ;;  %652 = vrot.lane.b32.xlu0 %v1456_v32, %s1767_s21 }
  0xd1   : > { %v761_v42 = vpop.permute.xlu1 %760  ;;  %v745_v43 = vpop.permute.xlu0 %744 }
  0xd2   : > { %800 = vst.msk [vmem:[#allocation2 + $0x48] sm:$0xff] %vm790_vm6, %v761_v42  ;;  %792 = vst.msk [vmem:[#allocation2 + $0x8] sm:$0xff] %vm790_vm6, %v745_v43 }
  0xd3   : > { %766 = vrot.lane.b32.xlu1 %v1433_v41, %s1768_s24  ;;  %750 = vrot.lane.b32.xlu0 %v1943_v21, %s1768_s24 }
  0xd5   : > { %v856_v44 = vpop.permute.xlu1 %855  ;;  %v840_v45 = vpop.permute.xlu0 %839 }
  0xd6   : > { %896 = vst.msk [vmem:[#allocation2 + $0x40] sm:$0xff] %vm887_vm7, %v856_v44  ;;  %888 = vst.msk [vmem:[#allocation2] sm:$0xff] %vm887_vm7, %v840_v45 }
  0xd7   : > { %378 = vrot.lane.b32.xlu1 %v1464_v31, %s1764_s8  ;;  %362 = vrot.lane.b32.xlu0 %v1456_v32, %s1764_s8 }
  0xd9   : > { %v471_v46 = vpop.permute.xlu1 %470  ;;  %v455_v47 = vpop.permute.xlu0 %454 }
  0xda   : > { %508 = vst.msk [vmem:[#allocation2 + $0x58] sm:$0xff] %vm496_vm3, %v471_v46  ;;  %500 = vst.msk [vmem:[#allocation2 + $0x18] sm:$0xff] %vm496_vm3, %v455_v47 }
  0xdb   : > { %476 = vrot.lane.b32.xlu1 %v1433_v41, %s1765_s17  ;;  %460 = vrot.lane.b32.xlu0 %v1943_v21, %s1765_s17 }
  0xdd   : > { %v566_v49 = vpop.permute.xlu1 %565  ;;  %v550_v50 = vpop.permute.xlu0 %549 }
  0xde   : > { %604 = vst.msk [vmem:[#allocation2 + $0x50] sm:$0xff] %vm593_vm4, %v566_v49  ;;  %596 = vst.msk [vmem:[#allocation2 + $0x10] sm:$0xff] %vm593_vm4, %v550_v50 }
  0xdf   : > { %768 = vrot.lane.b32.xlu1 %v1434_v48, %s1768_s24  ;;  %752 = vrot.lane.b32.xlu0 %v1940_v20, %s1768_s24 }
  0xe1   : > { %v858_v52 = vpop.permute.xlu1 %857  ;;  %v842_v53 = vpop.permute.xlu0 %841 }
  0xe2   : > { %897 = vst.msk [vmem:[#allocation2 + $0x48] sm:$0xff] %vm887_vm7, %v858_v52  ;;  %889 = vst.msk [vmem:[#allocation2 + $0x8] sm:$0xff] %vm887_vm7, %v842_v53 }
  0xe3   : > { %863 = vrot.lane.b32.xlu1 %v1449_v51, %s1769_s25  ;;  %847 = vrot.lane.b32.xlu0 %v1875_v3, %s1769_s25 }
  0xe5   : > { %v953_v21 = vpop.permute.xlu1 %952  ;;  %v937_v54 = vpop.permute.xlu0 %936 }
  0xe6   : > { %993 = vst.msk [vmem:[#allocation2 + $0x40] sm:$0xff] %vm984_vm8, %v953_v21  ;;  %985 = vst.msk [vmem:[#allocation2] sm:$0xff] %vm984_vm8, %v937_v54 }
  0xe7   : > { %478 = vrot.lane.b32.xlu1 %v1434_v48, %s1765_s17  ;;  %462 = vrot.lane.b32.xlu0 %v1940_v20, %s1765_s17 }
  0xe9   : > { %v276_v55 = vpop.permute.xlu1 %275  ;;  %v260_v56 = vpop.permute.xlu0 %259 }
  0xea   : > { %312 = vst.msk [vmem:[#allocation2 + $0x60] sm:$0xff] %vm299_vm1, %v276_v55  ;;  %304 = vst.msk [vmem:[#allocation2 + $0x20] sm:$0xff] %vm299_vm1, %v260_v56 }
  0xeb   : > { %573 = vrot.lane.b32.xlu1 %v1449_v51, %s1766_s18  ;;  %557 = vrot.lane.b32.xlu0 %v1875_v3, %s1766_s18  ;;  %v1465_v3 = vld [vmem:[%s1865_s6 + $0xc2] sm:$0xff] }
  0xed   : > { %v568_v58 = vpop.permute.xlu1 %567  ;;  %v552_v59 = vpop.permute.xlu0 %551  ;;  %v1001_v60 = vld [vmem:[#allocation2] sm:$0xff] }
  0xee   : > { %v1009_v61 = vld [vmem:[#allocation2 + $0x40] sm:$0xff]  ;;  %605 = vst.msk [vmem:[#allocation2 + $0x58] sm:$0xff] %vm593_vm4, %v568_v58  ;;  %597 = vst.msk [vmem:[#allocation2 + $0x18] sm:$0xff] %vm593_vm4, %v552_v59  ;;  %1536 = vmatprep.mubr.msk.f32.mxu0 %vm1026_vm9, %v1001_v60 }
  0xef   : > { %1548 = vmatprep.mubr.msk.f32.mxu1 %vm1026_vm9, %v1009_v61  ;;  %865 = vrot.lane.b32.xlu1 %v1450_v57, %s1769_s25 }
  0xf0   : > { %849 = vrot.lane.b32.xlu0 %v1872_v2, %s1769_s25 }
  0xf1   : > { %v663_v20 = vpop.permute.xlu1 %662  ;;  %v647_v62 = vpop.permute.xlu0 %646 }
  0xf2   : > { %701 = vst.msk [vmem:[#allocation2 + $0x50] sm:$0xff] %vm690_vm5, %v663_v20  ;;  %693 = vst.msk [vmem:[#allocation2 + $0x10] sm:$0xff] %vm690_vm5, %v647_v62 }
  0xf3   : > { %960 = vrot.lane.b32.xlu1 %v1465_v3, %s1770_s4 }
  0xf4   : > { %944 = vrot.lane.b32.xlu0 %v1896_v8, %s1770_s4 }
  0xf5   : > { %v955_v63 = vpop.permute.xlu1 %954  ;;  %v939_v0 = vpop.permute.xlu0 %938 }
  0xf6   : > { %994 = vst.msk [vmem:[#allocation2 + $0x48] sm:$0xff] %vm984_vm8, %v955_v63  ;;  %986 = vst.msk [vmem:[#allocation2 + $0x8] sm:$0xff] %vm984_vm8, %v939_v0 }
  0xf7   : > { %575 = vrot.lane.b32.xlu1 %v1450_v57, %s1766_s18 }
  0xf8   : > { %559 = vrot.lane.b32.xlu0 %v1872_v2, %s1766_s18  ;;  %s1492_s18 = sshll.u32 %s1745_s12, 4 }
  0xf9   : > { %v278_v1 = vpop.permute.xlu1 %277  ;;  %v262_v5 = vpop.permute.xlu0 %261 }
  0xfa   : > { %313 = vst.msk [vmem:[#allocation2 + $0x68] sm:$0xff] %vm299_vm1, %v278_v1  ;;  %305 = vst.msk [vmem:[#allocation2 + $0x28] sm:$0xff] %vm299_vm1, %v262_v5 }
  0xfb   : > { %670 = vrot.lane.b32.xlu1 %v1465_v3, %s1767_s21 }
  0xfc   : > { %654 = vrot.lane.b32.xlu0 %v1896_v8, %s1767_s21 }
  0xfd   : > { %v373_v9 = vpop.permute.xlu1 %372  ;;  %v357_v10 = vpop.permute.xlu0 %356  ;;  %v1002_v11 = vld [vmem:[#allocation2 + $0x8] sm:$0xff] }
  0xfe   : > { %v1010_v12 = vld [vmem:[#allocation2 + $0x48] sm:$0xff]  ;;  %409 = vst.msk [vmem:[#allocation2 + $0x60] sm:$0xff] %vm396_vm2, %v373_v9  ;;  %401 = vst.msk [vmem:[#allocation2 + $0x20] sm:$0xff] %vm396_vm2, %v357_v10  ;;  %1537 = vmatmul.mubr.msk.f32.vlgmr.msra.gmra.mrb[0].mxu0 %vm1026_vm9, %v1002_v11 }
  0xff   : > { %1549 = vmatmul.mubr.msk.f32.vlgmr.msra.gmra.mrb[0].mxu1 %vm1026_vm9, %v1010_v12  ;;  %962 = vrot.lane.b32.xlu1 %v1466_v7, %s1770_s4 }
 0x100   : > { %946 = vrot.lane.b32.xlu0 %v1923_v14, %s1770_s4 }
 0x101   : > { %v665_v2 = vpop.permute.xlu1 %664  ;;  %v649_v8 = vpop.permute.xlu0 %648 }
 0x102   : > { %702 = vst.msk [vmem:[#allocation2 + $0x58] sm:$0xff] %vm690_vm5, %v665_v2  ;;  %694 = vst.msk [vmem:[#allocation2 + $0x18] sm:$0xff] %vm690_vm5, %v649_v8 }
 0x103   : > { %672 = vrot.lane.b32.xlu1 %v1466_v7, %s1767_s21 }
 0x104   : > { %656 = vrot.lane.b32.xlu0 %v1923_v14, %s1767_s21  ;;  %v1451_v14 = vld [vmem:[%s1865_s6 + $0xd9] sm:$0xff]  ;;  %s1488_s21 = sshll.u32 %s1749_s13, 5 }
 0x105   : > { %v763_v15 = vpop.permute.xlu1 %762  ;;  %v747_v16 = vpop.permute.xlu0 %746 }
 0x106   : > { %801 = vst.msk [vmem:[#allocation2 + $0x50] sm:$0xff] %vm790_vm6, %v763_v15  ;;  %793 = vst.msk [vmem:[#allocation2 + $0x10] sm:$0xff] %vm790_vm6, %v747_v16 }
 0x107   : > { %770 = vrot.lane.b32.xlu1 %v1435_v13, %s1768_s24 }
 0x108   : > { %754 = vrot.lane.b32.xlu0 %v1878_v4, %s1768_s24  ;;  %v1452_v4 = vld [vmem:[%s1865_s6 + $0xe1] sm:$0xff] }
 0x109   : > { %v375_v18 = vpop.permute.xlu1 %374  ;;  %v359_v19 = vpop.permute.xlu0 %358 }
 0x10a   : > { %410 = vst.msk [vmem:[#allocation2 + $0x68] sm:$0xff] %vm396_vm2, %v375_v18  ;;  %402 = vst.msk [vmem:[#allocation2 + $0x28] sm:$0xff] %vm396_vm2, %v359_v19 }
 0x10b   : > { %772 = vrot.lane.b32.xlu1 %v1436_v17, %s1768_s24 }
 0x10c   : > { %756 = vrot.lane.b32.xlu0 %v1882_v6, %s1768_s24  ;;  %v1467_v6 = vld [vmem:[%s1865_s6 + $0xda] sm:$0xff]  ;;  %s1251_s24 = sadd.s32 %s1492_s18, %s1488_s21 }
 0x10d   : > { %v473_v22 = vpop.permute.xlu1 %472  ;;  %v457_v23 = vpop.permute.xlu0 %456 }
 0x10e   : > { %509 = vst.msk [vmem:[#allocation2 + $0x60] sm:$0xff] %vm496_vm3, %v473_v22  ;;  %501 = vst.msk [vmem:[#allocation2 + $0x20] sm:$0xff] %vm496_vm3, %v457_v23 }
 0x10f   : > { %867 = vrot.lane.b32.xlu1 %v1451_v14, %s1769_s25 }
 0x110   : > { %851 = vrot.lane.b32.xlu0 %v1970_v24, %s1769_s25  ;;  %v1468_v24 = vld [vmem:[%s1865_s6 + $0xe2] sm:$0xff]  ;;  %s170_s6 = sand.u32 1, %s1737_s10  }
 0x111   : > { %v765_v25 = vpop.permute.xlu1 %764  ;;  %v749_v27 = vpop.permute.xlu0 %748  ;;  %s1365_s8 = sshll.u32 %s170_s6, 7  ;;  %s2375_s12 = scalar_lea.sflag [#allocation4], %s170_s6 }
 0x112   : > { %802 = vst.msk [vmem:[#allocation2 + $0x58] sm:$0xff] %vm790_vm6, %v765_v25  ;;  %794 = vst.msk [vmem:[#allocation2 + $0x18] sm:$0xff] %vm790_vm6, %v749_v27  ;;  %s2345_s17 = scalar_lea.vmem [#allocation3], %s1365_s8 }
 0x113   : > { %869 = vrot.lane.b32.xlu1 %v1452_v4, %s1769_s25 }
 0x114   : > { %853 = vrot.lane.b32.xlu0 %v1980_v26, %s1769_s25  ;;  %s1489_s25 = sshll.u32 %s1251_s24, 7 }
 0x115   : > { %v860_v29 = vpop.permute.xlu1 %859  ;;  %v844_v31 = vpop.permute.xlu0 %843  ;;  %s2365_s28 = scalar_lea.hbm %s2430_s2, %s1489_s25 }
 0x116   : > { %898 = vst.msk [vmem:[#allocation2 + $0x50] sm:$0xff] %vm887_vm7, %v860_v29  ;;  %890 = vst.msk [vmem:[#allocation2 + $0x10] sm:$0xff] %vm887_vm7, %v844_v31 }
 0x117   : > { %964 = vrot.lane.b32.xlu1 %v1467_v6, %s1770_s4 }
 0x118   : > { %948 = vrot.lane.b32.xlu0 %v1987_v28, %s1770_s4 }
 0x119   : > { %v475_v32 = vpop.permute.xlu1 %474  ;;  %v459_v33 = vpop.permute.xlu0 %458 }
 0x11a   : > { %510 = vst.msk [vmem:[#allocation2 + $0x68] sm:$0xff] %vm496_vm3, %v475_v32  ;;  %502 = vst.msk [vmem:[#allocation2 + $0x28] sm:$0xff] %vm496_vm3, %v459_v33 }
 0x11b   : > { %966 = vrot.lane.b32.xlu1 %v1468_v24, %s1770_s4 }
 0x11c   : > { %950 = vrot.lane.b32.xlu0 %v2000_v30, %s1770_s4  ;;  %s1254_s4 = sshll.u32 %s2345_s17, 4  ;;  %s2367_s4 = int_to_ptr.vmem [resolvable:$true] %s1254_s4 }
 0x11d   : > { %v570_v26 = vpop.permute.xlu1 %569  ;;  %v554_v34 = vpop.permute.xlu0 %553  ;;  %s1667_s13 = scalar_lea.vmem %s2367_s4, 2048  ;;  %p1674_p2 = scmp.lt.s32.totalorder %s2367_s4, %s1672_s30 }
 0x11e   : > { %606 = vst.msk [vmem:[#allocation2 + $0x60] sm:$0xff] %vm593_vm4, %v570_v26  ;;  %598 = vst.msk [vmem:[#allocation2 + $0x20] sm:$0xff] %vm593_vm4, %v554_v34  ;;  %p1668_p13 = scmp.ne.s32.totalorder %s2367_s4, %s1667_s13  ;;  %p1675_p4 = scmp.lt.s32.totalorder %s1673_s3, %s1667_s13 }
 0x120   : > { %p1669_p0 = pnand %p1668_p13, %p1839_p3  ;;  %p1676_p5 = por %p1675_p4, %p1674_p2 }
 0x121   : > { %v862_v35 = vpop.permute.xlu1 %861  ;;  %v846_v28 = vpop.permute.xlu0 %845 }
 0x122   : > { %899 = vst.msk [vmem:[#allocation2 + $0x58] sm:$0xff] %vm887_vm7, %v862_v35  ;;  %891 = vst.msk [vmem:[#allocation2 + $0x18] sm:$0xff] %vm887_vm7, %v846_v28  ;;  %p1670_p1 = pneg %p1669_p0 }
 0x124   : > { %p1677_p6 = pnand %p1676_p5, %p1670_p1 }
 0x125   : > { %v957_v36 = vpop.permute.xlu1 %956  ;;  %v941_v37 = vpop.permute.xlu0 %940 }
 0x126   : > { %995 = vst.msk [vmem:[#allocation2 + $0x50] sm:$0xff] %vm984_vm8, %v957_v36  ;;  %987 = vst.msk [vmem:[#allocation2 + $0x10] sm:$0xff] %vm984_vm8, %v941_v37 }
 0x129   : > { %v280_v38 = vpop.permute.xlu1 %279  ;;  %v264_v30 = vpop.permute.xlu0 %263 }
 0x12a   : > { %314 = vst.msk [vmem:[#allocation2 + $0x70] sm:$0xff] %vm299_vm1, %v280_v38  ;;  %306 = vst.msk [vmem:[#allocation2 + $0x30] sm:$0xff] %vm299_vm1, %v264_v30 }
 0x12d   : > { %v572_v39 = vpop.permute.xlu1 %571  ;;  %v556_v40 = vpop.permute.xlu0 %555  ;;  %v1003_v41 = vld [vmem:[#allocation2 + $0x10] sm:$0xff] }
 0x12e   : > { %v1011_v42 = vld [vmem:[#allocation2 + $0x50] sm:$0xff]  ;;  %607 = vst.msk [vmem:[#allocation2 + $0x68] sm:$0xff] %vm593_vm4, %v572_v39  ;;  %599 = vst.msk [vmem:[#allocation2 + $0x28] sm:$0xff] %vm593_vm4, %v556_v40  ;;  %1539 = vmatprep.mubr.msk.f32.mxu0 %vm1026_vm9, %v1003_v41 }
 0x12f   : > { %1551 = vmatprep.mubr.msk.f32.mxu1 %vm1026_vm9, %v1011_v42 }
 0x131   : > { %v667_v43 = vpop.permute.xlu1 %666  ;;  %v651_v44 = vpop.permute.xlu0 %650 }
 0x132   : > { %703 = vst.msk [vmem:[#allocation2 + $0x60] sm:$0xff] %vm690_vm5, %v667_v43  ;;  %695 = vst.msk [vmem:[#allocation2 + $0x20] sm:$0xff] %vm690_vm5, %v651_v44 }
 0x135   : > { %v959_v45 = vpop.permute.xlu1 %958  ;;  %v943_v46 = vpop.permute.xlu0 %942 }
 0x136   : > { %996 = vst.msk [vmem:[#allocation2 + $0x58] sm:$0xff] %vm984_vm8, %v959_v45  ;;  %988 = vst.msk [vmem:[#allocation2 + $0x18] sm:$0xff] %vm984_vm8, %v943_v46 }
 0x139   : > { %v282_v47 = vpop.permute.xlu1 %281  ;;  %v266_v48 = vpop.permute.xlu0 %265 }
 0x13a   : > { %315 = vst.msk [vmem:[#allocation2 + $0x78] sm:$0xff] %vm299_vm1, %v282_v47  ;;  %307 = vst.msk [vmem:[#allocation2 + $0x38] sm:$0xff] %vm299_vm1, %v266_v48 }
 0x13d   : > { %v377_v49 = vpop.permute.xlu1 %376  ;;  %v361_v50 = vpop.permute.xlu0 %360  ;;  %v1004_v51 = vld [vmem:[#allocation2 + $0x18] sm:$0xff] }
 0x13e   : > { %v1012_v52 = vld [vmem:[#allocation2 + $0x58] sm:$0xff]  ;;  %411 = vst.msk [vmem:[#allocation2 + $0x70] sm:$0xff] %vm396_vm2, %v377_v49  ;;  %403 = vst.msk [vmem:[#allocation2 + $0x30] sm:$0xff] %vm396_vm2, %v361_v50  ;;  %1540 = vmatmul.mubr.msk.f32.gmra.mrb[2].mxu0 %vm1026_vm9, %v1004_v51 }
 0x13f   : > { %1552 = vmatmul.mubr.msk.f32.gmra.mrb[2].mxu1 %vm1026_vm9, %v1012_v52 }
 0x141   : > { %v669_v53 = vpop.permute.xlu1 %668  ;;  %v653_v21 = vpop.permute.xlu0 %652 }
 0x142   : > { %704 = vst.msk [vmem:[#allocation2 + $0x68] sm:$0xff] %vm690_vm5, %v669_v53  ;;  %696 = vst.msk [vmem:[#allocation2 + $0x28] sm:$0xff] %vm690_vm5, %v653_v21 }
 0x145   : > { %v767_v54 = vpop.permute.xlu1 %766  ;;  %v751_v55 = vpop.permute.xlu0 %750 }
 0x146   : > { %803 = vst.msk [vmem:[#allocation2 + $0x60] sm:$0xff] %vm790_vm6, %v767_v54  ;;  %795 = vst.msk [vmem:[#allocation2 + $0x20] sm:$0xff] %vm790_vm6, %v751_v55 }
 0x149   : > { %v379_v56 = vpop.permute.xlu1 %378  ;;  %v363_v57 = vpop.permute.xlu0 %362 }
 0x14a   : > { %412 = vst.msk [vmem:[#allocation2 + $0x78] sm:$0xff] %vm396_vm2, %v379_v56  ;;  %404 = vst.msk [vmem:[#allocation2 + $0x38] sm:$0xff] %vm396_vm2, %v363_v57 }
 0x14d   : > { %v477_v58 = vpop.permute.xlu1 %476  ;;  %v461_v59 = vpop.permute.xlu0 %460 }
 0x14e   : > { %511 = vst.msk [vmem:[#allocation2 + $0x70] sm:$0xff] %vm496_vm3, %v477_v58  ;;  %503 = vst.msk [vmem:[#allocation2 + $0x30] sm:$0xff] %vm496_vm3, %v461_v59 }
 0x151   : > { %v769_v60 = vpop.permute.xlu1 %768  ;;  %v753_v61 = vpop.permute.xlu0 %752 }
 0x152   : > { %804 = vst.msk [vmem:[#allocation2 + $0x68] sm:$0xff] %vm790_vm6, %v769_v60  ;;  %796 = vst.msk [vmem:[#allocation2 + $0x28] sm:$0xff] %vm790_vm6, %v753_v61 }
 0x155   : > { %v864_v3 = vpop.permute.xlu1 %863  ;;  %v848_v20 = vpop.permute.xlu0 %847 }
 0x156   : > { %900 = vst.msk [vmem:[#allocation2 + $0x60] sm:$0xff] %vm887_vm7, %v864_v3  ;;  %892 = vst.msk [vmem:[#allocation2 + $0x20] sm:$0xff] %vm887_vm7, %v848_v20 }
 0x159   : > { %v479_v62 = vpop.permute.xlu1 %478  ;;  %v463_v63 = vpop.permute.xlu0 %462 }
 0x15a   : > { %512 = vst.msk [vmem:[#allocation2 + $0x78] sm:$0xff] %vm496_vm3, %v479_v62  ;;  %504 = vst.msk [vmem:[#allocation2 + $0x38] sm:$0xff] %vm496_vm3, %v463_v63 }
 0x15d   : > { %v574_v0 = vpop.permute.xlu1 %573  ;;  %v558_v1 = vpop.permute.xlu0 %557 }
 0x15e   : > { %608 = vst.msk [vmem:[#allocation2 + $0x70] sm:$0xff] %vm593_vm4, %v574_v0  ;;  %600 = vst.msk [vmem:[#allocation2 + $0x30] sm:$0xff] %vm593_vm4, %v558_v1 }
 0x161   : > { %v866_v5 = vpop.permute.xlu1 %865 }
 0x162   : > { %v850_v7 = vpop.permute.xlu0 %849  ;;  %901 = vst.msk [vmem:[#allocation2 + $0x68] sm:$0xff] %vm887_vm7, %v866_v5 }
 0x163   : > { %893 = vst.msk [vmem:[#allocation2 + $0x28] sm:$0xff] %vm887_vm7, %v850_v7 }
 0x165   : > { %v961_v9 = vpop.permute.xlu1 %960 }
 0x166   : > { %v945_v10 = vpop.permute.xlu0 %944  ;;  %997 = vst.msk [vmem:[#allocation2 + $0x60] sm:$0xff] %vm984_vm8, %v961_v9 }
 0x167   : > { %989 = vst.msk [vmem:[#allocation2 + $0x20] sm:$0xff] %vm984_vm8, %v945_v10 }
 0x169   : > { %v576_v11 = vpop.permute.xlu1 %575 }
 0x16a   : > { %v560_v12 = vpop.permute.xlu0 %559  ;;  %609 = vst.msk [vmem:[#allocation2 + $0x78] sm:$0xff] %vm593_vm4, %v576_v11 }
 0x16b   : > { %601 = vst.msk [vmem:[#allocation2 + $0x38] sm:$0xff] %vm593_vm4, %v560_v12 }
 0x16d   : > { %v671_v2 = vpop.permute.xlu1 %670  ;;  %v1013_v15 = vld [vmem:[#allocation2 + $0x60] sm:$0xff] }
 0x16e   : > { %v655_v8 = vpop.permute.xlu0 %654  ;;  %v1005_v13 = vld [vmem:[#allocation2 + $0x20] sm:$0xff]  ;;  %705 = vst.msk [vmem:[#allocation2 + $0x70] sm:$0xff] %vm690_vm5, %v671_v2  ;;  %1554 = vmatprep.mubr.msk.f32.mxu1 %vm1026_vm9, %v1013_v15 }
 0x16f   : > { %697 = vst.msk [vmem:[#allocation2 + $0x30] sm:$0xff] %vm690_vm5, %v655_v8  ;;  %1542 = vmatprep.mubr.msk.f32.mxu0 %vm1026_vm9, %v1005_v13 }
 0x171   : > { %v963_v16 = vpop.permute.xlu1 %962 }
 0x172   : > { %v947_v17 = vpop.permute.xlu0 %946  ;;  %998 = vst.msk [vmem:[#allocation2 + $0x68] sm:$0xff] %vm984_vm8, %v963_v16 }
 0x173   : > { %990 = vst.msk [vmem:[#allocation2 + $0x28] sm:$0xff] %vm984_vm8, %v947_v17 }
 0x175   : > { %v673_v18 = vpop.permute.xlu1 %672 }
 0x176   : > { %v657_v19 = vpop.permute.xlu0 %656  ;;  %706 = vst.msk [vmem:[#allocation2 + $0x78] sm:$0xff] %vm690_vm5, %v673_v18 }
 0x177   : > { %698 = vst.msk [vmem:[#allocation2 + $0x38] sm:$0xff] %vm690_vm5, %v657_v19 }
 0x179   : > { %v771_v14 = vpop.permute.xlu1 %770  ;;  %v1014_v4 = vld [vmem:[#allocation2 + $0x68] sm:$0xff] }
 0x17a   : > { %v755_v22 = vpop.permute.xlu0 %754  ;;  %v1006_v23 = vld [vmem:[#allocation2 + $0x28] sm:$0xff]  ;;  %805 = vst.msk [vmem:[#allocation2 + $0x70] sm:$0xff] %vm790_vm6, %v771_v14  ;;  %1555 = vmatmul.mubr.msk.f32.gmra.mrb[4].mxu1 %vm1026_vm9, %v1014_v4 }
 0x17b   : > { %797 = vst.msk [vmem:[#allocation2 + $0x30] sm:$0xff] %vm790_vm6, %v755_v22  ;;  %1543 = vmatmul.mubr.msk.f32.gmra.mrb[4].mxu0 %vm1026_vm9, %v1006_v23 }
 0x17d   : > { %v773_v25 = vpop.permute.xlu1 %772 }
 0x17e   : > { %v757_v27 = vpop.permute.xlu0 %756  ;;  %806 = vst.msk [vmem:[#allocation2 + $0x78] sm:$0xff] %vm790_vm6, %v773_v25 }
 0x17f   : > { %798 = vst.msk [vmem:[#allocation2 + $0x38] sm:$0xff] %vm790_vm6, %v757_v27 }
 0x181   : > { %v868_v6 = vpop.permute.xlu1 %867 }
 0x182   : > { %v852_v29 = vpop.permute.xlu0 %851  ;;  %902 = vst.msk [vmem:[#allocation2 + $0x70] sm:$0xff] %vm887_vm7, %v868_v6 }
 0x183   : > { %894 = vst.msk [vmem:[#allocation2 + $0x30] sm:$0xff] %vm887_vm7, %v852_v29 }
 0x185   : > { %v870_v31 = vpop.permute.xlu1 %869 }
 0x186   : > { %v854_v24 = vpop.permute.xlu0 %853  ;;  %903 = vst.msk [vmem:[#allocation2 + $0x78] sm:$0xff] %vm887_vm7, %v870_v31 }
 0x187   : > { %895 = vst.msk [vmem:[#allocation2 + $0x38] sm:$0xff] %vm887_vm7, %v854_v24 }
 0x189   : > { %v965_v32 = vpop.permute.xlu1 %964 }
 0x18a   : > { %v949_v33 = vpop.permute.xlu0 %948  ;;  %999 = vst.msk [vmem:[#allocation2 + $0x70] sm:$0xff] %vm984_vm8, %v965_v32 }
 0x18b   : > { %991 = vst.msk [vmem:[#allocation2 + $0x30] sm:$0xff] %vm984_vm8, %v949_v33 }
 0x18d   : > { %v967_v26 = vpop.permute.xlu1 %966 }
 0x18e   : > { %v951_v34 = vpop.permute.xlu0 %950  ;;  %1000 = vst.msk [vmem:[#allocation2 + $0x78] sm:$0xff] %vm984_vm8, %v967_v26 }
 0x18f   : > { %992 = vst.msk [vmem:[#allocation2 + $0x38] sm:$0xff] %vm984_vm8, %v951_v34 }
 0x191   : > { %v1015_v28 = vld [vmem:[#allocation2 + $0x70] sm:$0xff] }
 0x192   : > { %v1007_v35 = vld [vmem:[#allocation2 + $0x30] sm:$0xff]  ;;  %1557 = vmatprep.mubr.msk.f32.mxu1 %vm1026_vm9, %v1015_v28 }
 0x193   : > { %1545 = vmatprep.mubr.msk.f32.mxu0 %vm1026_vm9, %v1007_v35 }
 0x195   : > { %v1016_v37 = vld [vmem:[#allocation2 + $0x78] sm:$0xff] }
 0x196   : > { %v1008_v36 = vld [vmem:[#allocation2 + $0x38] sm:$0xff]  ;;  %1558 = vmatmul.mubr.msk.f32.gmra.mrb[6].mxu1 %vm1026_vm9, %v1016_v37 }
 0x197   : > { %1546 = vmatmul.mubr.msk.f32.gmra.mrb[6].mxu0 %vm1026_vm9, %v1008_v36 }
 0x1d1   : > { %v1538_v38 = vpop.f32.mrb[0].mxu0 }
 0x1d2   : > { %v1550_v30 = vpop.f32.mrb[0].mxu1  ;;  %1221 = vst [vmem:[%s2345_s17 + $0x8] sm:$0xff] %v1538_v38  ;;  %v1141_v39 = vpop.f32.mrb[1].mxu0 }
 0x1d3   : > { %1229 = vst [vmem:[%s2345_s17 + $0x48] sm:$0xff] %v1550_v30  ;;  %v1181_v40 = vpop.f32.mrb[1].mxu1  ;;  %1220 = vst [vmem:[%s2345_s17] sm:$0xff] %v1141_v39 }
 0x1d4   : > { %1228 = vst [vmem:[%s2345_s17 + $0x40] sm:$0xff] %v1181_v40 }
 0x211   : > { %v1541_v41 = vpop.f32.mrb[2].mxu0 }
 0x212   : > { %v1553_v42 = vpop.f32.mrb[2].mxu1  ;;  %1223 = vst [vmem:[%s2345_s17 + $0x18] sm:$0xff] %v1541_v41  ;;  %v1151_v43 = vpop.f32.mrb[3].mxu0 }
 0x213   : > { %1231 = vst [vmem:[%s2345_s17 + $0x58] sm:$0xff] %v1553_v42  ;;  %v1191_v44 = vpop.f32.mrb[3].mxu1  ;;  %1222 = vst [vmem:[%s2345_s17 + $0x10] sm:$0xff] %v1151_v43 }
 0x214   : > { %1230 = vst [vmem:[%s2345_s17 + $0x50] sm:$0xff] %v1191_v44 }
 0x24d   : > { %v1556_v46 = vpop.f32.mrb[4].mxu1 }
 0x24e   : > { %v1544_v45 = vpop.f32.mrb[4].mxu0  ;;  %1233 = vst [vmem:[%s2345_s17 + $0x68] sm:$0xff] %v1556_v46  ;;  %v1201_v48 = vpop.f32.mrb[5].mxu1 }
 0x24f   : > { %1225 = vst [vmem:[%s2345_s17 + $0x28] sm:$0xff] %v1544_v45  ;;  %v1161_v47 = vpop.f32.mrb[5].mxu0  ;;  %1232 = vst [vmem:[%s2345_s17 + $0x60] sm:$0xff] %v1201_v48 }
 0x250   : > { %1224 = vst [vmem:[%s2345_s17 + $0x20] sm:$0xff] %v1161_v47 }
 0x269   : > { %v1559_v50 = vpop.f32.mrb[6].mxu1 }
 0x26a   : > { %v1547_v49 = vpop.f32.mrb[6].mxu0  ;;  %1235 = vst [vmem:[%s2345_s17 + $0x78] sm:$0xff] %v1559_v50  ;;  %v1211_v52 = vpop.f32.mrb[7].mxu1 }
 0x26b   : > { %1227 = vst [vmem:[%s2345_s17 + $0x38] sm:$0xff] %v1547_v49  ;;  %v1171_v51 = vpop.f32.mrb[7].mxu0  ;;  %1234 = vst [vmem:[%s2345_s17 + $0x70] sm:$0xff] %v1211_v52 }
 0x26c   : > { %1226 = vst [vmem:[%s2345_s17 + $0x30] sm:$0xff] %v1171_v51 }
 0x26d   : > { %1680 = shalt.err (!%p1677_p6)
}
 0x26e   : > { %s1681_s6 = scalar_lea.hbm %s2365_s28, 2048  ;;  %s1685_s18 = scalar_lea.hbm %s2430_s2, 8192 }
 0x26f   : > { %p1682_p7 = scmp.ne.s32.totalorder %s2365_s28, %s1681_s6  ;;  %p1686_p11 = scmp.lt.u32.totalorder %s2365_s28, %s2430_s2 }
 0x270   : > { %p1687_p12 = scmp.lt.u32.totalorder %s1685_s18, %s1681_s6  ;;  %p1689_p0 = scmp.lt.u32.totalorder %s1681_s6, %s2365_s28 }
 0x271   : > { %p1683_p9 = pnand %p1682_p7, %p1839_p3 }
 0x272   : > { %p1688_p13 = por %p1687_p12, %p1686_p11 }
 0x273   : > { %p1684_p10 = pneg %p1683_p9 }
 0x274   : > { %p1690_p1 = por %p1689_p0, %p1688_p13 }
 0x276   : > { %p1691_p2 = pnand %p1690_p1, %p1684_p10 }
 0x278   : > { %1694 = shalt.err (!%p1691_p2)
}
 0x279   : > { %s1772_s25 = smov 128  }
 0x27a   : > { %1587 = dma.vmem_to_hbm [thread:$0]  (%p1839_p3), %s2367_s4, 2048, %s2365_s28, %s2375_s12, %s1772_s25, %s1772_s25, %s1763_s7  }
 0x27b PF: > { %p1593_p4 = scmp.ge.s32.totalorder %s1761_s16, 2  ;;  %s1269_s5 = sand.u32 1, %s1733_s9  }
 0x27c   : > { %s1270_s26 = scalar_lea.sflag [#allocation4], %s1269_s5 }
 0x27d   : > { %p1590_p5 = pnand %p1593_p4, %p1848_p8 }
 0x27f   : > { %1728 = dma.done.wait (!%p1590_p5), %s1270_s26, 2048  }
 0x280   : > { %1730 = vsyncadd (!%p1590_p5), %s1270_s26, 4294965248  ;;  %s15_s16 = sadd.s32 1, %s1761_s16   ;;  %s2433_s9 = smov %s1737_s10 }
 0x281   : > { %p12_p6 = scmp.ge.s32.totalorder %s15_s16, 6   ;;  %s2434_s10 = smov %s1741_s11 }
 0x282   : > { %s2435_s11 = smov %s1857_s27  ;;  %s2436_s12 = smov %s1753_s14 }
 0x283   : > { %s2437_s13 = smov %s1757_s15  ;;  %s2438_s14 = smov %s2441_s19 }
 0x284   : > { %s2439_s15 = smov %s2445_s20  ;;  %14 = sbr.rel (!%p12_p6) target bundleno = 5 (0x5), region = 69 }
 0x28b   :  { %1275 = vsyncpa [#allocation4], 1 }
 0x28c   :  { %1277 = vsyncpa [#allocation4 + $0x1], 1 }

</bundles_post_ra>
